<compile_context>
chip_gen: v5e
topology: v5e:2x2
jax: 0.10.0
libtpu: 0.0.40
codegen_flags: <defaults>
</compile_context>

<pallas_src>
import functools
import math

import jax
import jax.numpy as jnp
import numpy as np
from jax.experimental import pallas as pl
from jax.experimental.pallas import tpu as pltpu

D_K = 64          # fixed in the PyTorch module
D_FF = 2048       # fixed in the PyTorch module
LN_EPS = 1e-5     # fresh nn.LayerNorm => gamma=1, beta=0, eps=1e-5
NEG_INF = -1.0e9  # masked_fill_ value in the PyTorch code
VMEM_LIMIT = 48 * 1024 * 1024   # above 16/32 MiB scoped defaults, < v7x 64 MiB


# ----------------------------------------------------------------------------
# Helpers
# ----------------------------------------------------------------------------
def _layernorm(y):
    mean = jnp.mean(y, axis=-1, keepdims=True)
    var = jnp.mean((y - mean) ** 2, axis=-1, keepdims=True)
    return (y - mean) * jax.lax.rsqrt(var + LN_EPS)


def _tile(n, prefs):
    """Largest preferred tile that divides n, else the full extent."""
    for t in prefs:
        if n % t == 0:
            return t
    return n


def _cost(flops, bytes_accessed, transcendentals=0):
    return pl.CostEstimate(flops=int(flops),
                           transcendentals=int(transcendentals),
                           bytes_accessed=int(bytes_accessed))


# ----------------------------------------------------------------------------
# Pallas kernels
# ----------------------------------------------------------------------------
def matmul_kernel(x_ref, w_ref, o_ref):
    """(tm, K) bf16 @ (K, tn) bf16 -> (tm, tn), f32 accumulation."""
    o_ref[...] = jnp.dot(x_ref[...], w_ref[...],
                         preferred_element_type=jnp.float32).astype(o_ref.dtype)


def ffn_kernel(x_ref, w1_ref, w2_ref, o_ref):
    """Position-wise FFN + residual + LayerNorm (row-tiled, bf16 in/out)."""
    x = x_ref[...]                                            # (tm, D) bf16
    h = jnp.dot(x, w1_ref[...], preferred_element_type=jnp.float32)
    h = jnp.maximum(h, 0.0).astype(jnp.bfloat16)
    y = jnp.dot(h, w2_ref[...], preferred_element_type=jnp.float32)
    y = y + x.astype(jnp.float32)
    o_ref[...] = _layernorm(y).astype(o_ref.dtype)


def attn_kernel(q_ref, k_ref, v_ref, kpad_ref, wo_ref, res_ref,
                out_ref, attn_ref, *, n_heads, causal):
    """Fused MHA core for one (batch, q-tile) grid step.

    q_ref: (1, tq, HD) bf16 ; k_ref/v_ref: (1, Sk, HD) bf16 (flat head layout,
    heads split in-kernel with static lane slices).
    kpad_ref: (1, 1, Sk) f32, 1.0 == padded key.
    wo_ref: (HD, D) bf16 ; res_ref: (1, tq, D) bf16 residual.
    Outputs: out (1, tq, D) bf16 (proj + residual + LayerNorm) and
             attn (1, H, tq, Sk) f32 (exact softmax probabilities).
    """
    tq = q_ref.shape[1]
    sk = k_ref.shape[1]
    scale = 1.0 / math.sqrt(D_K)

    masked = kpad_ref[0] > 0.5                                 # (1, sk) bool
    if causal:
        q0 = pl.program_id(1) * tq
        rows = jax.lax.broadcasted_iota(jnp.int32, (tq, sk), 0) + q0
        cols = jax.lax.broadcasted_iota(jnp.int32, (tq, sk), 1)
        masked = jnp.logical_or(masked, cols > rows)           # (tq, sk)

    # Accumulate output projection per head on top of the residual; the
    # (tq, HD) context never needs to be materialized / stored.
    y = res_ref[0].astype(jnp.float32)                         # (tq, D)
    for h in range(n_heads):
        sl = slice(h * D_K, (h + 1) * D_K)
        q_h = q_ref[0, :, sl] * scale                          # (tq, 64) bf16
        k_h = k_ref[0, :, sl]                                  # (sk, 64) bf16
        v_h = v_ref[0, :, sl]                                  # (sk, 64) bf16

        s = jax.lax.dot_general(q_h, k_h, (((1,), (1,)), ((), ())),
                                preferred_element_type=jnp.float32)  # (tq, sk)
        s = jnp.where(masked, jnp.float32(NEG_INF), s)
        m = jnp.max(s, axis=-1, keepdims=True)
        e = jnp.exp(s - m)
        p = e / jnp.sum(e, axis=-1, keepdims=True)             # exact softmax
        attn_ref[0, h] = p

        ctx_h = jnp.dot(p.astype(jnp.bfloat16), v_h,
                        preferred_element_type=jnp.float32)    # (tq, 64)
        y = y + jnp.dot(ctx_h.astype(jnp.bfloat16), wo_ref[sl, :],
                        preferred_element_type=jnp.float32)

    out_ref[0] = _layernorm(y).astype(out_ref.dtype)


# ----------------------------------------------------------------------------
# pallas_call wrappers
# ----------------------------------------------------------------------------
def linear(x2d, w, out_dtype=jnp.bfloat16):
    """(M, K) bf16 @ (K, N) bf16, tiled over rows AND output columns."""
    M, K = x2d.shape
    N = w.shape[1]
    tm = _tile(M, (256, 128))
    tn = _tile(N, (512, 256, 128))
    byts = (2 * M * K + 2 * K * N * (M // tm)
            + M * N * jnp.dtype(out_dtype).itemsize)
    return pl.pallas_call(
        matmul_kernel,
        out_shape=jax.ShapeDtypeStruct((M, N), out_dtype),
        grid=(M // tm, N // tn),
        in_specs=[pl.BlockSpec((tm, K), lambda i, j: (i, 0)),
                  pl.BlockSpec((K, tn), lambda i, j: (0, j))],
        out_specs=pl.BlockSpec((tm, tn), lambda i, j: (i, j)),
        compiler_params=pltpu.CompilerParams(
            dimension_semantics=("parallel", "parallel"),
            vmem_limit_bytes=VMEM_LIMIT),
        cost_estimate=_cost(2 * M * K * N, byts),
    )(x2d, w)


def ffn_block(x, w1, w2):
    B, S, D = x.shape
    M = B * S
    tm = _tile(M, (256, 128))     # capped: keeps the (tm, D_FF) hidden small
    out = pl.pallas_call(
        ffn_kernel,
        out_shape=jax.ShapeDtypeStruct((M, D), jnp.bfloat16),
        grid=(M // tm,),
        in_specs=[pl.BlockSpec((tm, D), lambda i: (i, 0)),
                  pl.BlockSpec((D, D_FF), lambda i: (0, 0)),
                  pl.BlockSpec((D_FF, D), lambda i: (0, 0))],
        out_specs=pl.BlockSpec((tm, D), lambda i: (i, 0)),
        compiler_params=pltpu.CompilerParams(
            dimension_semantics=("parallel",),
            vmem_limit_bytes=VMEM_LIMIT),
        cost_estimate=_cost(4 * M * D * D_FF, 6 * M * D + 4 * D * D_FF),
    )(x.reshape(M, D), w1, w2)
    return out.reshape(B, S, D)


def attn_block(q, k, v, kpad, wo, residual, n_heads, causal):
    """q: (B,Sq,HD), k/v: (B,Sk,HD) bf16; kpad: (B,1,Sk) f32; wo: (HD,D) bf16;
    residual: (B,Sq,D) bf16.  Returns (out bf16 (B,Sq,D), attn f32)."""
    B, Sq, HD = q.shape
    Sk = k.shape[1]
    D = wo.shape[1]
    tq = _tile(Sq, (256, 128))
    kernel = functools.partial(attn_kernel, n_heads=n_heads, causal=causal)
    flops = 4 * B * n_heads * Sq * Sk * D_K + 2 * B * Sq * HD * D
    byts = (2 * B * Sq * HD + 4 * B * Sk * HD * (Sq // tq) + 4 * B * Sk
            + 2 * HD * D + 4 * B * Sq * D + 4 * B * n_heads * Sq * Sk)
    out, attn = pl.pallas_call(
        kernel,
        out_shape=(jax.ShapeDtypeStruct((B, Sq, D), jnp.bfloat16),
                   jax.ShapeDtypeStruct((B, n_heads, Sq, Sk), jnp.float32)),
        grid=(B, Sq // tq),
        in_specs=[pl.BlockSpec((1, tq, HD), lambda b, qi: (b, qi, 0)),
                  pl.BlockSpec((1, Sk, HD), lambda b, qi: (b, 0, 0)),
                  pl.BlockSpec((1, Sk, HD), lambda b, qi: (b, 0, 0)),
                  pl.BlockSpec((1, 1, Sk), lambda b, qi: (b, 0, 0)),
                  pl.BlockSpec((HD, D), lambda b, qi: (0, 0)),
                  pl.BlockSpec((1, tq, D), lambda b, qi: (b, qi, 0))],
        out_specs=(pl.BlockSpec((1, tq, D), lambda b, qi: (b, qi, 0)),
                   pl.BlockSpec((1, n_heads, tq, Sk),
                                lambda b, qi: (b, 0, qi, 0))),
        compiler_params=pltpu.CompilerParams(
            dimension_semantics=("parallel", "parallel"),
            vmem_limit_bytes=VMEM_LIMIT),
        cost_estimate=_cost(flops, byts,
                            transcendentals=B * n_heads * Sq * Sk),
    )(q, k, v, kpad, wo, residual)
    return out, attn


def self_attention(x, kpad, wqkv, wo, n_heads, causal):
    B, S, D = x.shape
    HD = n_heads * D_K
    qkv = linear(x.reshape(B * S, D), wqkv)            # fused QKV, (B*S, 3HD)
    q = qkv[:, :HD].reshape(B, S, HD)
    k = qkv[:, HD:2 * HD].reshape(B, S, HD)
    v = qkv[:, 2 * HD:].reshape(B, S, HD)
    return attn_block(q, k, v, kpad, wo, x, n_heads, causal)


def cross_attention(x_q, x_kv, kpad, wq, wkv, wo, n_heads):
    B, Sq, D = x_q.shape
    Sk = x_kv.shape[1]
    HD = n_heads * D_K
    q = linear(x_q.reshape(B * Sq, D), wq).reshape(B, Sq, HD)
    kv = linear(x_kv.reshape(B * Sk, D), wkv)          # fused KV, (B*Sk, 2HD)
    k = kv[:, :HD].reshape(B, Sk, HD)
    v = kv[:, HD:].reshape(B, Sk, HD)
    return attn_block(q, k, v, kpad, wo, x_q, n_heads, causal=False)


# ----------------------------------------------------------------------------
# Parameters, masks, full forward
# ----------------------------------------------------------------------------
def make_pe_table(d_model, max_len=512):
    position = np.arange(max_len, dtype=np.float64)[:, None]
    div_term = np.exp(np.arange(0, d_model, 2, dtype=np.float64) *
                      (-math.log(10000.0) / d_model))
    pe = np.zeros((max_len, d_model), dtype=np.float32)
    pe[:, 0::2] = np.sin(position * div_term)
    pe[:, 1::2] = np.cos(position * div_term)
    return jnp.asarray(pe)


def init_linear(key, d_in, d_out):
    bound = 1.0 / math.sqrt(d_in)
    return jax.random.uniform(key, (d_in, d_out), jnp.float32, -bound, bound)


def _init_enc_layer(key, d_model, n_heads):
    hd = n_heads * D_K
    k = jax.random.split(key, 6)
    return {"wq": init_linear(k[0], d_model, hd),
            "wk": init_linear(k[1], d_model, hd),
            "wv": init_linear(k[2], d_model, hd),
            "wo": init_linear(k[3], hd, d_model),
            "w1": init_linear(k[4], d_model, D_FF),
            "w2": init_linear(k[5], D_FF, d_model)}


def _init_dec_layer(key, d_model, n_heads):
    hd = n_heads * D_K
    k = jax.random.split(key, 10)
    return {"self_wq": init_linear(k[0], d_model, hd),
            "self_wk": init_linear(k[1], d_model, hd),
            "self_wv": init_linear(k[2], d_model, hd),
            "self_wo": init_linear(k[3], hd, d_model),
            "enc_wq": init_linear(k[4], d_model, hd),
            "enc_wk": init_linear(k[5], d_model, hd),
            "enc_wv": init_linear(k[6], d_model, hd),
            "enc_wo": init_linear(k[7], hd, d_model),
            "w1": init_linear(k[8], d_model, D_FF),
            "w2": init_linear(k[9], D_FF, d_model)}


def init_transformer_params(key, n_heads, d_model, n_layers,
                            src_vocab_size, tgt_vocab_size):
    ks = jax.random.split(key, 3 + 2 * n_layers)
    return {
        "src_emb": jax.random.normal(ks[0], (src_vocab_size, d_model), jnp.float32),
        "tgt_emb": jax.random.normal(ks[1], (tgt_vocab_size, d_model), jnp.float32),
        "proj_w": init_linear(ks[2], d_model, tgt_vocab_size),
        "pe": make_pe_table(d_model),
        "enc_layers": [_init_enc_layer(ks[3 + i], d_model, n_heads)
                       for i in range(n_layers)],
        "dec_layers": [_init_dec_layer(ks[3 + n_layers + i], d_model, n_heads)
                       for i in range(n_layers)],
    }


def prepare_params(params):
    """One-time weight prep: bf16 casts + fused QKV / KV concatenations."""
    bf = lambda w: w.astype(jnp.bfloat16)
    enc = [{"wqkv": bf(jnp.concatenate([lp["wq"], lp["wk"], lp["wv"]], axis=1)),
            "wo": bf(lp["wo"]), "w1": bf(lp["w1"]), "w2": bf(lp["w2"])}
           for lp in params["enc_layers"]]
    dec = [{"self_wqkv": bf(jnp.concatenate(
                [lp["self_wq"], lp["self_wk"], lp["self_wv"]], axis=1)),
            "self_wo": bf(lp["self_wo"]),
            "enc_wq": bf(lp["enc_wq"]),
            "enc_wkv": bf(jnp.concatenate([lp["enc_wk"], lp["enc_wv"]], axis=1)),
            "enc_wo": bf(lp["enc_wo"]),
            "w1": bf(lp["w1"]), "w2": bf(lp["w2"])}
           for lp in params["dec_layers"]]
    return {"src_emb": params["src_emb"], "tgt_emb": params["tgt_emb"],
            "pe": params["pe"], "proj_w": bf(params["proj_w"]),
            "enc_layers": enc, "dec_layers": dec}


def transformer_forward(prep, enc_inputs, dec_inputs, n_heads):
    B, Se = enc_inputs.shape
    Sd = dec_inputs.shape[1]
    D = prep["src_emb"].shape[1]

    # Tiny key-pad rows (B, 1, Sk); causal mask is generated in-kernel.
    enc_kpad = (enc_inputs == 0).astype(jnp.float32).reshape(B, 1, Se)
    dec_kpad = (dec_inputs == 0).astype(jnp.float32).reshape(B, 1, Sd)

    # -------- Encoder --------
    x = (jnp.take(prep["src_emb"], enc_inputs, axis=0)
         + prep["pe"][:Se][None]).astype(jnp.bfloat16)
    enc_attns = []
    for lp in prep["enc_layers"]:
        x, a = self_attention(x, enc_kpad, lp["wqkv"], lp["wo"], n_heads,
                              causal=False)
        x = ffn_block(x, lp["w1"], lp["w2"])
        enc_attns.append(a)
    enc_out = x

    # -------- Decoder --------
    y = (jnp.take(prep["tgt_emb"], dec_inputs, axis=0)
         + prep["pe"][:Sd][None]).astype(jnp.bfloat16)
    dec_self_attns, dec_enc_attns = [], []
    for lp in prep["dec_layers"]:
        y, sa = self_attention(y, dec_kpad, lp["self_wqkv"], lp["self_wo"],
                               n_heads, causal=True)
        y, ea = cross_attention(y, enc_out, enc_kpad, lp["enc_wq"],
                                lp["enc_wkv"], lp["enc_wo"], n_heads)
        y = ffn_block(y, lp["w1"], lp["w2"])
        dec_self_attns.append(sa)
        dec_enc_attns.append(ea)

    # -------- Final projection (flattened, like .view(-1, V)) --------
    logits = linear(y.reshape(B * Sd, D), prep["proj_w"], out_dtype=jnp.float32)
    return logits, enc_attns, dec_self_attns, dec_enc_attns


# ----------------------------------------------------------------------------
# Pure-JAX f32 reference (mirrors the PyTorch forward) for a sanity check
# ----------------------------------------------------------------------------
def build_masks(enc_inputs, dec_inputs):
    B, Se = enc_inputs.shape
    Sd = dec_inputs.shape[1]

    def pad_mask(seq_q, seq_k):
        lq, lk = seq_q.shape[1], seq_k.shape[1]
        return jnp.broadcast_to((seq_k == 0)[:, None, :],
                                (B, lq, lk)).astype(jnp.float32)

    enc_self_mask = pad_mask(enc_inputs, enc_inputs)
    subseq = jnp.triu(jnp.ones((Sd, Sd), jnp.float32), k=1)[None, :, :]
    dec_self_mask = ((pad_mask(dec_inputs, dec_inputs) + subseq) > 0
                     ).astype(jnp.float32)
    dec_enc_mask = pad_mask(dec_inputs, enc_inputs)
    return enc_self_mask, dec_self_mask, dec_enc_mask


def _ref_ln(y):
    mean = y.mean(-1, keepdims=True)
    var = ((y - mean) ** 2).mean(-1, keepdims=True)
    return (y - mean) / jnp.sqrt(var + LN_EPS)


def _ref_mha(x_q, x_kv, mask, wq, wk, wv, wo, n_heads):
    B, Sq, D = x_q.shape
    Sk = x_kv.shape[1]
    Q = (x_q @ wq).reshape(B, Sq, n_heads, D_K).transpose(0, 2, 1, 3)
    K = (x_kv @ wk).reshape(B, Sk, n_heads, D_K).transpose(0, 2, 1, 3)
    V = (x_kv @ wv).reshape(B, Sk, n_heads, D_K).transpose(0, 2, 1, 3)
    scores = jnp.einsum("bhqd,bhkd->bhqk", Q, K) / math.sqrt(D_K)
    scores = jnp.where(mask[:, None, :, :] > 0.5, NEG_INF, scores)
    attn = jax.nn.softmax(scores, axis=-1)
    ctx = jnp.einsum("bhqk,bhkd->bhqd", attn, V)
    ctx = ctx.transpose(0, 2, 1, 3).reshape(B, Sq, n_heads * D_K)
    return _ref_ln(ctx @ wo + x_q)


def _ref_ffn(x, w1, w2):
    return _ref_ln(jnp.maximum(x @ w1, 0.0) @ w2 + x)


def transformer_ref(params, enc_inputs, dec_inputs, n_heads):
    B, Se = enc_inputs.shape
    Sd = dec_inputs.shape[1]
    enc_self_mask, dec_self_mask, dec_enc_mask = build_masks(enc_inputs, dec_inputs)

    x = jnp.take(params["src_emb"], enc_inputs, axis=0) + params["pe"][:Se][None]
    for lp in params["enc_layers"]:
        x = _ref_mha(x, x, enc_self_mask, lp["wq"], lp["wk"], lp["wv"],
                     lp["wo"], n_heads)
        x = _ref_ffn(x, lp["w1"], lp["w2"])
    enc_out = x

    y = jnp.take(params["tgt_emb"], dec_inputs, axis=0) + params["pe"][:Sd][None]
    for lp in params["dec_layers"]:
        y = _ref_mha(y, y, dec_self_mask, lp["self_wq"], lp["self_wk"],
                     lp["self_wv"], lp["self_wo"], n_heads)
        y = _ref_mha(y, enc_out, dec_enc_mask, lp["enc_wq"], lp["enc_wk"],
                     lp["enc_wv"], lp["enc_wo"], n_heads)
        y = _ref_ffn(y, lp["w1"], lp["w2"])

    D = y.shape[-1]
    return (y.reshape(B * Sd, D)) @ params["proj_w"]


# ----------------------------------------------------------------------------
if __name__ == "__main__":
    n_heads, d_model, n_layers = 2, 32, 2
    src_vocab, tgt_vocab = 40, 50
    batch, seq_enc, seq_dec = 2, 8, 8

    key = jax.random.PRNGKey(0)
    kp, ke, kd = jax.random.split(key, 3)

    params = init_transformer_params(kp, n_heads, d_model, n_layers,
                                     src_vocab, tgt_vocab)
    prep = prepare_params(params)   # one-time bf16 + fused-weight prep

    # token ids; include explicit 0 (pad) tokens so the pad masks are exercised
    enc_inputs = jax.random.randint(ke, (batch, seq_enc), 1, src_vocab,
                                    dtype=jnp.int32).at[:, -1:].set(0)
    dec_inputs = jax.random.randint(kd, (batch, seq_dec), 1, tgt_vocab,
                                    dtype=jnp.int32).at[:, -2:].set(0)

    logits, enc_attns, dec_self_attns, dec_enc_attns = transformer_forward(
        prep, enc_inputs, dec_inputs, n_heads)
    logits = jax.block_until_ready(logits)
    for a in enc_attns + dec_self_attns + dec_enc_attns:
        jax.block_until_ready(a)

    # sanity check against a pure-JAX f32 reference; kernels run bf16 matmuls
    # and bf16 activation storage, so the tolerance is loosened accordingly.
    ref_logits = transformer_ref(params, enc_inputs, dec_inputs, n_heads)
    np.testing.assert_allclose(np.asarray(logits), np.asarray(ref_logits),
                               rtol=1.5e-1, atol=1.5e-1)

    assert logits.shape == (batch * seq_dec, tgt_vocab)
    assert enc_attns[0].shape == (batch, n_heads, seq_enc, seq_enc)
    assert dec_self_attns[0].shape == (batch, n_heads, seq_dec, seq_dec)
    assert dec_enc_attns[0].shape == (batch, n_heads, seq_dec, seq_enc)

    # attention rows are exact-softmax probabilities (f32) -> tight tolerance
    row_sums = np.asarray(jnp.sum(dec_self_attns[0], axis=-1))
    np.testing.assert_allclose(row_sums, np.ones_like(row_sums),
                               rtol=1e-3, atol=1e-3)

    print("KERNEL_OK")
</pallas_src>

<mosaic_0001>
module attributes {stable_mosaic.version = 11 : i64} {
  func.func @matmul_kernel(%arg0: i32, %arg1: i32, %arg2: memref<16x32xbf16, #tpu.memory_space<vmem>>, %arg3: memref<32x128xbf16, #tpu.memory_space<vmem>>, %arg4: memref<16x128xbf16, #tpu.memory_space<vmem>>) attributes {dimension_semantics = [#tpu.dimension_semantics<parallel>, #tpu.dimension_semantics<parallel>], iteration_bounds = array<i64: 1, 3>, scalar_prefetch = 0 : i64, scratch_operands = 0 : i64, tpu.core_type = #tpu.core_type<tc>, window_params = [{transform_indices = @transform_0, window_bounds = array<i64: 16, 32>}, {transform_indices = @transform_1, window_bounds = array<i64: 32, 128>}, {transform_indices = @transform_2, window_bounds = array<i64: 16, 128>}]} {
    %c0 = arith.constant 0 : index
    %c0_0 = arith.constant 0 : index
    %0 = vector.load %arg2[%c0, %c0_0] : memref<16x32xbf16, #tpu.memory_space<vmem>>, vector<16x32xbf16>
    %c0_1 = arith.constant 0 : index
    %c0_2 = arith.constant 0 : index
    %1 = vector.load %arg3[%c0_1, %c0_2] : memref<32x128xbf16, #tpu.memory_space<vmem>>, vector<32x128xbf16>
    %cst = arith.constant dense<0.000000e+00> : vector<16x128xf32>
    %2 = tpu.matmul %0, %1, %cst {dimension_numbers = #tpu.dot_dimension_numbers<[1], [0], [0], [1], [0, 0, 1, 1], [], []>} : vector<16x32xbf16>, vector<32x128xbf16>, vector<16x128xf32> -> vector<16x128xf32>
    %3 = arith.truncf %2 : vector<16x128xf32> to vector<16x128xbf16>
    %c0_3 = arith.constant 0 : index
    %c0_4 = arith.constant 0 : index
    %4 = vector.load %arg4[%c0_3, %c0_4] : memref<16x128xbf16, #tpu.memory_space<vmem>>, vector<16x128xbf16>
    tpu.vector_store %arg4[%c0_3, %c0_4], %3 {strides = array<i32>} : memref<16x128xbf16, #tpu.memory_space<vmem>>, vector<16x128xbf16>,
    return
  }
  func.func @transform_0(%arg0: i32, %arg1: i32) -> (i32, i32) {
    %c0_i32 = arith.constant 0 : i32
    %c0_i32_0 = arith.constant 0 : i32
    return %arg0, %c0_i32 : i32, i32
  }
  func.func @transform_1(%arg0: i32, %arg1: i32) -> (i32, i32) {
    %c0_i32 = arith.constant 0 : i32
    %c0_i32_0 = arith.constant 0 : i32
    return %c0_i32, %arg1 : i32, i32
  }
  func.func @transform_2(%arg0: i32, %arg1: i32) -> (i32, i32) {
    %c0_i32 = arith.constant 0 : i32
    return %arg0, %arg1 : i32, i32
  }
}

</mosaic_0001>

<bundles_post_ra>
// kernel: tpu_custom_call.1
= control target key start
LH: loop header
LB: loop body
LE: loop exit
PB: predicated region body
PF: predicated region fallthrough
CT: control target
= control target key end

     0   :  { %7 = vsyncpa [#allocation3], 0  ;;  %s803_s0 = inlined_call_operand.hbm [shape: bf16[16,32], index: 0, kind: input, shape index: {}]   ;;  %s804_s1 = inlined_call_operand.hbm [shape: bf16[32,384], index: 1, kind: input, shape index: {}]   ;;  %s805_s2 = inlined_call_operand.hbm [shape: bf16[16,384], index: 2, kind: output, shape index: {}]  }
   0x1   :  { %8 = vsyncpa [#allocation6], 0 }
   0x2   :  { %10 = vsyncpa [#allocation6 + $0x1], 0 }
   0x3   :  { %11 = vsyncpa [#allocation4], 0 }
   0x4   :  { %13 = vsyncpa [#allocation4 + $0x1], 0  ;;  %s650_s9 = smov 0   ;;  %s652_s10 = smov 0  }
   0x5   :  { %s654_s11 = smov 0   ;;  %s656_s12 = smov 0  }
   0x6   :  { %s658_s13 = smov 0   ;;  %s660_s14 = smov 0  }
   0x7 LB: > { %s365_s15 = sadd.s32 4294967295, %s626_s14   ;;  %s366_s16 = sadd.s32 4294967294, %s626_s14   ;;  %s626_s14 = sphi %s660_s14, %s19_s14   ;;  %s622_s13 = sphi %s658_s13, %s819_s13   ;;  %s618_s12 = sphi %s656_s12, %s818_s12   ;;  %s614_s11 = sphi %s654_s11, %s817_s11   ;;  %s610_s10 = sphi %s652_s10, %s816_s10   ;;  %s606_s9 = sphi %s650_s9, %s815_s9  }
   0x8   : > { %p77_p0 = scmp.ne.s32.totalorder %s610_s10, %s606_s9  ;;  %p684_p1 = scmp.eq.s32.totalorder %s365_s15, 0 }
   0x9   : > { %p688_p2 = scmp.eq.s32.totalorder %s365_s15, 2  ;;  %p109_p3 = scmp.eq.s32.totalorder %s366_s16, 2 }
   0xa   : > { %p694_p4 = por %p684_p1, %p77_p0  ;;  %p367_p5 = scmp.ge.s32.totalorder %s626_s14, 1 }
   0xb   : > { %p699_p6 = por %p109_p3, %p77_p0  ;;  %p116_p7 = scmp.lt.s32.totalorder %s626_s14, 4 }
   0xc   : > { %s130_s23 = sshll.u32 %s803_s0, 4  ;;  %s628_s25 = smov [#allocation2]   ;;  %s131_s23 = int_to_ptr.hbm [resolvable:$true] %s130_s23 }
   0xd   : > { %p707_p8 = pnand %p367_p5, %p116_p7  ;;  %s132_s26 = sshll.u32 %s628_s25, 4  ;;  %s133_s26 = int_to_ptr.vmem [resolvable:$true] %s132_s26 }
   0xe   : > { %s806_s27 = smov 64   ;;  %s630_s28 = smov 4  }
   0xf   : > { %p409_p9 = pneg %p707_p8  ;;  %s28_s29 = sadd.s32 1, %s622_s13 }
  0x10   : > { %p29_p11 = scmp.ge.s32.totalorder %s28_s29, 3  ;;  %s64_s30 = sadd.s32 1, %s614_s11 }
  0x11   : > { %p410_p10 = pnand %p409_p9, %p684_p1  ;;  %p71_p12 = scmp.ne.s32.totalorder %s614_s11, %s610_s10 }
  0x12   : > { %p72_p13 = scmp.eq.s32.totalorder %s626_s14, 0  ;;  %s821_s29 = smov (%p29_p11, %s28_s29), 0 }
  0x13   : > { %412 = dma.hbm_to_vmem [thread:$0]  (!%p410_p10), %s131_s23, 128, %s133_s26, [#allocation3], %s806_s27, %s806_s27, %s630_s28  }
  0x14   : > { %p725_p0 = por %p72_p13, %p71_p12  ;;  %p731_p3 = por %p688_p2, %p71_p12 }
  0x15   : > { %s61_s5 = ssub.s32 %s622_s13, %s821_s29  ;;  %p422_p5 = scmp.lt.s32.totalorder %s626_s14, 3 }
  0x16   : > { %p62_p7 = scmp.eq.s32.totalorder %s61_s5, 0  ;;  %s146_s6 = sand.u32 1, %s614_s11  }
  0x17   : > { %s370_s7 = sshll.u32 %s146_s6, 4  ;;  %s371_s15 = sshll.u32 %s622_s13, 2 }
  0x18   : > { %s740_s8 = scalar_select %p62_p7, %s614_s11, %s64_s30  }
  0x19   : > { %s154_s22 = scalar_lea.hbm %s804_s1, %s371_s15  ;;  %s150_s23 = scalar_lea.vmem [#allocation5], %s370_s7 }
  0x1a   : > { %s157_s25 = sshll.u32 %s150_s23, 4  ;;  %s155_s18 = sshll.u32 %s154_s22, 4  ;;  %s158_s25 = int_to_ptr.vmem [resolvable:$true] %s157_s25  ;;  %s156_s18 = int_to_ptr.hbm [resolvable:$true] %s155_s18 }
  0x1b   : > { %p414_p2 = pnand %p422_p5, %p725_p0  ;;  %s147_s26 = scalar_lea.sflag [#allocation6], %s146_s6 }
  0x1c   : > { %s631_s27 = smov 192   ;;  %s814_s5 = smov 64  }
  0x1d   : > { %416 = dma.hbm_to_vmem [thread:$0]  (!%p414_p2), %s156_s18, 256, %s158_s25, %s147_s26, %s631_s27, %s814_s5, %s630_s28  }
  0x1e   : > { %169 = sbr.rel (%p707_p8) target bundleno = 189 (0xbd), region = 28 }
  0x23   : > { %593 = dma.done.wait (%p684_p1), [#allocation3], 128  }
  0x24   : > { %595 = vsyncadd (%p684_p1), [#allocation3], 4294967168  ;;  %s757_s30 = sand.u32 1, %s610_s10  }
  0x25   : > { %s374_s3 = sshll.u32 %s757_s30, 4  ;;  %s177_s6 = scalar_lea.sflag [#allocation6], %s757_s30 }
  0x26   : > { %s180_s7 = scalar_lea.vmem [#allocation5], %s374_s3 }
  0x27   : > { %597 = dma.done.wait (%p694_p4), %s177_s6, 256  }
  0x28   : > { %599 = vsyncadd (%p694_p4), %s177_s6, 4294967040  ;;  %v395_v0 = vld [vmem:[%s180_s7 + $0x8] sm:$0xff]  ;;  %v394_v1 = vld [vmem:[%s180_s7] sm:$0xff]  ;;  %vm228_vm0 = vcmask 261120   ;;  %s375_s17 = sshll.u32 %s757_s30, 3  ;;  %s390_s24 = sshll.u32 %s618_s12, 2 }
  0x29   : > { %238 = vmatpush.bf16.msra.mxu0 %v395_v0  ;;  %v393_v2 = vld [vmem:[#allocation2] sm:$0xff]  ;;  %s264_s15 = scalar_lea.hbm %s805_s2, %s390_s24  ;;  %s201_s19 = scalar_lea.vmem [#allocation7], %s375_s17 }
  0x2a   : > { %s265_s16 = sshll.u32 %s201_s19, 4  ;;  %s267_s21 = sshll.u32 %s264_s15, 4  ;;  %s266_s16 = int_to_ptr.vmem [resolvable:$true] %s265_s16  ;;  %s268_s21 = int_to_ptr.hbm [resolvable:$true] %s267_s21 }
  0x2b   : > { %s251_s22 = scalar_lea.sflag [#allocation4], %s757_s30  ;;  %s554_s23 = sshra.s32 %s268_s21, 4  ;;  %s555_s23 = int_to_ptr.hbm [resolvable:$true] %s554_s23 }
  0x2c   : > { %s556_s25 = scalar_lea.hbm %s555_s23, 8  ;;  %s560_s26 = scalar_lea.hbm %s805_s2, 24 }
  0x2d   : > { %239 = vmatpush.bf16.msra.mxu0 %v394_v1  ;;  %p557_p1 = scmp.ne.s32.totalorder %s555_s23, %s556_s25  ;;  %p561_p9 = scmp.lt.s32.totalorder %s555_s23, %s805_s2 }
  0x2e   : > { %p562_p10 = scmp.lt.s32.totalorder %s560_s26, %s556_s25 }
  0x2f   : > { %p558_p4 = pnand %p557_p1, %p731_p3 }
  0x30   : > { %388 = vmatmul.msk.bf16.vlgmr.msra.gmra.mxu0 %vm228_vm0, %v393_v2  ;;  %p563_p11 = por %p562_p10, %p561_p9 }
  0x31   : > { %p559_p8 = pneg %p558_p4 }
  0x33   : > { %p564_p12 = pnand %p563_p11, %p559_p8 }
  0xad   : > { %v241_v3 = vpop.f32.mrf.mxu0 }
  0xb5   : > { %v243_v4 = vpop.f32.mrf.mxu0 }
  0xb6   : > { %v399_v5 = vpack.c.bf16 %v243_v4, %v241_v3 }
  0xb8   : > { %400 = vst [vmem:[%s201_s19] sm:$0xff] %v399_v5  }
  0xb9   : > { %567 = shalt.err (!%p564_p12)
}
  0xba   : > { %s632_s30 = smov 64   ;;  %s633_s6 = smov 192  }
  0xbb   : > { %s634_s7 = smov 4  }
  0xbc   : > { %407 = dma.vmem_to_hbm [thread:$0]  (%p731_p3), %s266_s16, 128, %s268_s21, %s251_s22, %s632_s30, %s633_s6, %s634_s7  }
  0xbd PF: > { %p424_p13 = scmp.ge.s32.totalorder %s626_s14, 2  ;;  %s282_s17 = sand.u32 1, %s606_s9  }
  0xbe   : > { %s283_s24 = scalar_lea.sflag [#allocation4], %s282_s17 }
  0xbf   : > { %p418_p0 = pnand %p424_p13, %p699_p6 }
  0xc1   : > { %p419_p5 = pneg %p418_p0 }
  0xc3   : > { %601 = dma.done.wait (%p419_p5), %s283_s24, 128  }
  0xc4   : > { %603 = vsyncadd (%p419_p5), %s283_s24, 4294967168  ;;  %s19_s14 = sadd.s32 1, %s626_s14   ;;  %s815_s9 = smov %s610_s10 }
  0xc5   : > { %p16_p7 = scmp.ge.s32.totalorder %s19_s14, 5   ;;  %s816_s10 = smov %s614_s11 }
  0xc6   : > { %s817_s11 = smov %s740_s8  ;;  %s818_s12 = smov %s622_s13 }
  0xc7   : > { %s819_s13 = smov %s821_s29  ;;  %18 = sbr.rel (!%p16_p7) target bundleno = 7 (0x7), region = 79 }
  0xcc   :  { %289 = vsyncpa [#allocation3], 1 }
  0xcd   :  { %291 = vsyncpa [#allocation3 + $0x1], 1 }
  0xce   :  { %292 = vsyncpa [#allocation6], 1 }
  0xcf   :  { %294 = vsyncpa [#allocation6 + $0x1], 1 }
  0xd0   :  { %295 = vsyncpa [#allocation4], 1 }
  0xd1   :  { %297 = vsyncpa [#allocation4 + $0x1], 1 }

</bundles_post_ra>
